<compile_context>
chip_gen: v7x
topology: tpu7x:2x2x1
jax: 0.10.0
libtpu: 0.0.40
codegen_flags: <defaults>
</compile_context>

<pallas_src>
import functools

import jax
import jax.numpy as jnp
from jax import lax
from jax.experimental import pallas as pl
from jax.experimental.pallas import tpu as pltpu


def _recsys_kernel(uid_ref, mid_ref, users_t_ref, movies_t_ref, o_ref):
    """One grid step produces one lane-dense (1, TB) tile of scores.

    uid_ref, mid_ref : (1, TB) int32 VMEM   (lane-dense id tiles)
    users_t_ref      : (D, n_users_pad)  f32 VMEM (transposed table, resident)
    movies_t_ref     : (D, n_movies_pad) f32 VMEM (transposed table, resident)
    o_ref            : (1, TB) f32 output tile (lane-dense)
    """
    n_users = users_t_ref.shape[1]
    n_movies = movies_t_ref.shape[1]
    tb = o_ref.shape[1]

    uid = uid_ref[...]                       # (1, TB) int32
    mid = mid_ref[...]                       # (1, TB) int32

    # Vectorized one-hot gather on the MXU (transposed layout, batch in lanes):
    #   onehot[k, r] = (id[r] == k)  ->  emb_T = table_T @ onehot : (D, TB)
    # Out-of-range / padded ids give an all-zero column (safe, no OOB read).
    onehot_u = (lax.broadcasted_iota(jnp.int32, (n_users, tb), 0) == uid
                ).astype(jnp.float32)        # (n_users_pad, TB)
    onehot_m = (lax.broadcasted_iota(jnp.int32, (n_movies, tb), 0) == mid
                ).astype(jnp.float32)        # (n_movies_pad, TB)

    u_t = jnp.dot(users_t_ref[...], onehot_u,
                  preferred_element_type=jnp.float32)       # (D, TB)
    m_t = jnp.dot(movies_t_ref[...], onehot_m,
                  preferred_element_type=jnp.float32)       # (D, TB)

    # diag(U @ M^T) == row-wise dot product: full-lane VPU multiply, cheap
    # sublane reduce over D, unmasked lane-dense store.
    o_ref[...] = jnp.sum(u_t * m_t, axis=0, keepdims=True)  # (1, TB)


@functools.partial(jax.jit, static_argnames=("block_b",))
def basic_recsys_forward(user_table, movie_table, user_ids, movie_ids,
                         *, block_b=512):
    """Pallas implementation of BasicRecSys.forward.

    user_table : (n_users, D) float32 embedding table
    movie_table: (n_movies, D) float32 embedding table
    user_ids   : (B,) int32
    movie_ids  : (B,) int32
    returns    : (B, 1) float32
    """
    n_users, d = user_table.shape
    n_movies, d2 = movie_table.shape
    assert d == d2

    b = user_ids.shape[0]
    num_tiles = pl.cdiv(b, block_b)
    b_pad = num_tiles * block_b
    pad_b = b_pad - b

    # Lane-dense id tiles; padded ids point at row 0 (their outputs are sliced
    # away below and, being one-hot-gathered, can never read out of bounds).
    uid = jnp.pad(user_ids.astype(jnp.int32), (0, pad_b)).reshape(1, b_pad)
    mid = jnp.pad(movie_ids.astype(jnp.int32), (0, pad_b)).reshape(1, b_pad)

    # Transposed tables (D on sublanes, entities on lanes), entity axis padded
    # to a lane multiple so the one-hot matmul contraction is fully aligned.
    n_users_pad = ((n_users + 127) // 128) * 128
    n_movies_pad = ((n_movies + 127) // 128) * 128
    users_t = jnp.pad(user_table.astype(jnp.float32).T,
                      ((0, 0), (0, n_users_pad - n_users)))
    movies_t = jnp.pad(movie_table.astype(jnp.float32).T,
                       ((0, 0), (0, n_movies_pad - n_movies)))

    cost = pl.CostEstimate(
        flops=2 * b_pad * d * (n_users_pad + n_movies_pad) + 2 * b_pad * d,
        transcendentals=0,
        bytes_accessed=(4 * d * (n_users_pad + n_movies_pad)   # tables
                        + 4 * 2 * b_pad                        # id tiles
                        + 4 * b_pad),                          # output
    )

    out = pl.pallas_call(
        _recsys_kernel,
        out_shape=jax.ShapeDtypeStruct((1, b_pad), jnp.float32),
        grid_spec=pl.GridSpec(
            grid=(num_tiles,),
            in_specs=[
                pl.BlockSpec((1, block_b), lambda i: (0, i)),          # uid tile
                pl.BlockSpec((1, block_b), lambda i: (0, i)),          # mid tile
                # Whole transposed tables, resident across the grid.
                pl.BlockSpec((d, n_users_pad), lambda i: (0, 0)),
                pl.BlockSpec((d, n_movies_pad), lambda i: (0, 0)),
            ],
            out_specs=pl.BlockSpec((1, block_b), lambda i: (0, i)),
        ),
        compiler_params=pltpu.CompilerParams(
            # Batch tiles are independent -> megacore sharding on v7x.
            dimension_semantics=("parallel",),
        ),
        cost_estimate=cost,
    )(uid, mid, users_t, movies_t)

    return out[0, :b][:, None]


def reference_forward(user_table, movie_table, user_ids, movie_ids):
    """Pure-JAX reference mirroring the PyTorch code literally."""
    u = jnp.take(user_table, user_ids, axis=0)
    m = jnp.take(movie_table, movie_ids, axis=0)
    scores = jnp.matmul(u, m.T, precision=lax.Precision.HIGHEST)  # (B, B)
    return jnp.diagonal(scores)[:, None]                          # (B, 1)


if __name__ == "__main__":
    # Small, deterministic setup consistent with the module's __init__.
    n_users, n_movies, embedding_size = 50, 40, 32
    batch = 1000   # 2 tiles of 512 -> exercises tiling, padding, slicing and
                   # gives an even, balanced tile count for v7x megacore.

    key = jax.random.PRNGKey(0)
    k_u, k_m, k_uid, k_mid = jax.random.split(key, 4)

    # nn.Embedding default init is N(0, 1).
    user_table = jax.random.normal(k_u, (n_users, embedding_size), jnp.float32)
    movie_table = jax.random.normal(k_m, (n_movies, embedding_size), jnp.float32)

    user_ids = jax.random.randint(k_uid, (batch,), 0, n_users, jnp.int32)
    movie_ids = jax.random.randint(k_mid, (batch,), 0, n_movies, jnp.int32)

    out = basic_recsys_forward(user_table, movie_table, user_ids, movie_ids)
    out = jax.block_until_ready(out)

    ref = reference_forward(user_table, movie_table, user_ids, movie_ids)
    assert out.shape == (batch, 1), out.shape
    assert jnp.allclose(out, ref, atol=1e-4, rtol=1e-4), (
        float(jnp.max(jnp.abs(out - ref))))

    print("KERNEL_OK")
</pallas_src>

<mosaic_0001>
module attributes {stable_mosaic.version = 11 : i64} {
  func.func @_recsys_kernel(%arg0: i32, %arg1: memref<1x512xi32, #tpu.memory_space<vmem>>, %arg2: memref<1x512xi32, #tpu.memory_space<vmem>>, %arg3: memref<32x128xf32, #tpu.memory_space<vmem>>, %arg4: memref<32x128xf32, #tpu.memory_space<vmem>>, %arg5: memref<1x512xf32, #tpu.memory_space<vmem>>) attributes {dimension_semantics = [#tpu.dimension_semantics<parallel>], iteration_bounds = array<i64: 2>, scalar_prefetch = 0 : i64, scratch_operands = 0 : i64, tpu.core_type = #tpu.core_type<tc>, window_params = [{transform_indices = @transform_0, window_bounds = array<i64: 1, 512>}, {transform_indices = @transform_1, window_bounds = array<i64: 1, 512>}, {pipeline_mode = #tpu.pipeline_mode<synchronous>, transform_indices = @transform_2, window_bounds = array<i64: 32, 128>}, {pipeline_mode = #tpu.pipeline_mode<synchronous>, transform_indices = @transform_3, window_bounds = array<i64: 32, 128>}, {transform_indices = @transform_4, window_bounds = array<i64: 1, 512>}]} {
    %c0 = arith.constant 0 : index
    %c0_0 = arith.constant 0 : index
    %0 = vector.load %arg1[%c0, %c0_0] : memref<1x512xi32, #tpu.memory_space<vmem>>, vector<1x512xi32>
    %c0_1 = arith.constant 0 : index
    %c0_2 = arith.constant 0 : index
    %1 = vector.load %arg2[%c0_1, %c0_2] : memref<1x512xi32, #tpu.memory_space<vmem>>, vector<1x512xi32>
    %2 = tpu.iota {dimensions = array<i32: 0>} : vector<128x512xi32>
    %3 = vector.broadcast %0 : vector<1x512xi32> to vector<128x512xi32>
    %4 = arith.cmpi eq, %2, %3 : vector<128x512xi32>
    %5 = arith.extui %4 : vector<128x512xi1> to vector<128x512xi32>
    %6 = arith.sitofp %5 : vector<128x512xi32> to vector<128x512xf32>
    %7 = tpu.iota {dimensions = array<i32: 0>} : vector<128x512xi32>
    %8 = vector.broadcast %1 : vector<1x512xi32> to vector<128x512xi32>
    %9 = arith.cmpi eq, %7, %8 : vector<128x512xi32>
    %10 = arith.extui %9 : vector<128x512xi1> to vector<128x512xi32>
    %11 = arith.sitofp %10 : vector<128x512xi32> to vector<128x512xf32>
    %c0_3 = arith.constant 0 : index
    %c0_4 = arith.constant 0 : index
    %12 = vector.load %arg3[%c0_3, %c0_4] : memref<32x128xf32, #tpu.memory_space<vmem>>, vector<32x128xf32>
    %cst = arith.constant dense<0.000000e+00> : vector<32x512xf32>
    %13 = tpu.matmul %12, %6, %cst {dimension_numbers = #tpu.dot_dimension_numbers<[1], [0], [0], [1], [0, 0, 1, 1], [], []>} : vector<32x128xf32>, vector<128x512xf32>, vector<32x512xf32> -> vector<32x512xf32>
    %c0_5 = arith.constant 0 : index
    %c0_6 = arith.constant 0 : index
    %14 = vector.load %arg4[%c0_5, %c0_6] : memref<32x128xf32, #tpu.memory_space<vmem>>, vector<32x128xf32>
    %cst_7 = arith.constant dense<0.000000e+00> : vector<32x512xf32>
    %15 = tpu.matmul %14, %11, %cst_7 {dimension_numbers = #tpu.dot_dimension_numbers<[1], [0], [0], [1], [0, 0, 1, 1], [], []>} : vector<32x128xf32>, vector<128x512xf32>, vector<32x512xf32> -> vector<32x512xf32>
    %16 = arith.mulf %13, %15 : vector<32x512xf32>
    %cst_8 = arith.constant dense<0.000000e+00> : vector<512xf32>
    %17 = vector.multi_reduction <add>, %16, %cst_8 [0] : vector<32x512xf32> to vector<512xf32>
    %18 = vector.shape_cast %17 : vector<512xf32> to vector<1x512xf32>
    %c0_9 = arith.constant 0 : index
    %c0_10 = arith.constant 0 : index
    %19 = vector.load %arg5[%c0_9, %c0_10] : memref<1x512xf32, #tpu.memory_space<vmem>>, vector<1x512xf32>
    tpu.vector_store %arg5[%c0_9, %c0_10], %18 {strides = array<i32>} : memref<1x512xf32, #tpu.memory_space<vmem>>, vector<1x512xf32>,
    return
  }
  func.func @transform_0(%arg0: i32) -> (i32, i32) {
    %c0_i32 = arith.constant 0 : i32
    %c0_i32_0 = arith.constant 0 : i32
    return %c0_i32, %arg0 : i32, i32
  }
  func.func @transform_1(%arg0: i32) -> (i32, i32) {
    %c0_i32 = arith.constant 0 : i32
    %c0_i32_0 = arith.constant 0 : i32
    return %c0_i32, %arg0 : i32, i32
  }
  func.func @transform_2(%arg0: i32) -> (i32, i32) {
    %c0_i32 = arith.constant 0 : i32
    %c0_i32_0 = arith.constant 0 : i32
    %c0_i32_1 = arith.constant 0 : i32
    return %c0_i32, %c0_i32_0 : i32, i32
  }
  func.func @transform_3(%arg0: i32) -> (i32, i32) {
    %c0_i32 = arith.constant 0 : i32
    %c0_i32_0 = arith.constant 0 : i32
    %c0_i32_1 = arith.constant 0 : i32
    return %c0_i32, %c0_i32_0 : i32, i32
  }
  func.func @transform_4(%arg0: i32) -> (i32, i32) {
    %c0_i32 = arith.constant 0 : i32
    %c0_i32_0 = arith.constant 0 : i32
    return %c0_i32, %arg0 : i32, i32
  }
}

</mosaic_0001>

<bundles_post_ra>
// kernel: basic_recsys_forward.1
= control target key start
LH: loop header
LB: loop body
LE: loop exit
PB: predicated region body
PF: predicated region fallthrough
CT: control target
= control target key end

     0   :  { %s1597_s15 = smov 0   ;;  %s2086_s0 = inlined_call_operand.vmem [shape: s32[1,1024], index: 0, kind: input, shape index: {}]   ;;  %s2087_s1 = inlined_call_operand.vmem [shape: s32[1,1024], index: 1, kind: input, shape index: {}]   ;;  %s2088_s2 = inlined_call_operand.vmem [shape: f32[32,128], index: 2, kind: input, shape index: {}]   ;;  %s2089_s3 = inlined_call_operand.vmem [shape: f32[32,128], index: 3, kind: input, shape index: {}]   ;;  %s2090_s4 = inlined_call_operand.vmem [shape: f32[1,1024], index: 4, kind: output, shape index: {}]  }
   0x1 LB: > { %s1156_s16 = sadd.s32 4294967295, %s1567_s15   ;;  %p1160_p0 = scmp.ge.s32.totalorder %s1567_s15, 1  ;;  %s1567_s15 = sphi %s1597_s15, %s14_s15  }
   0x2   : > { %p172_p1 = scmp.lt.s32.totalorder %s1567_s15, 3 }
   0x4   : > { %p173_p2 = pnand %p1160_p0, %p172_p1 }
   0x5   : > { %s1161_s17 = sshll.u32 (!%p173_p2), %s1156_s16, 2  ;;  %v217_v0 = vlaneseq (!%p173_p2)  ;;  %v1569_v1 = vmov (!%p173_p2), 0.0   ;;  %v1570_v15 = vmov (!%p173_p2), 1.0|1.0   ;;  %v650_v33 = vld [vmem:[%s2088_s2] sm:$0xff] (!%p173_p2)  ;;  %v651_v34 = vld [vmem:[%s2088_s2 + $0x8] sm:$0xff] (!%p173_p2) }
   0x6   : > { %176 = sbr.rel (%p173_p2) target bundleno = 336 (0x150), region = 36  ;;  %p201_p3 = scmp.lt.s32.totalorder (!%p173_p2), %s1161_s17, 7  ;;  %718 = vmatprep.mubr.f32.mxu0 (!%p173_p2), %v1569_v1  ;;  %807 = vmatprep.mubr.f32.mxu1 (!%p173_p2), %v1569_v1  ;;  %v652_v35 = vld [vmem:[%s2088_s2 + $0x10] sm:$0xff] (!%p173_p2)  ;;  %v653_v36 = vld [vmem:[%s2088_s2 + $0x18] sm:$0xff] (!%p173_p2)  ;;  %v832_v37 = vld [vmem:[%s2089_s3] sm:$0xff] (!%p173_p2) }
   0x7   : > { %v1608_v2 = vshrl.u32 (!%p173_p2), %v217_v0, 7  ;;  %v833_v38 = vld [vmem:[%s2089_s3 + $0x8] sm:$0xff] (!%p173_p2)  ;;  %v834_v39 = vld [vmem:[%s2089_s3 + $0x10] sm:$0xff] (!%p173_p2)  ;;  %v835_v40 = vld [vmem:[%s2089_s3 + $0x18] sm:$0xff] (!%p173_p2) }
   0x9   : > { %v240_v3 = vsub.s32 (!%p173_p2), 1, %v1608_v2  ;;  %v248_v4 = vsub.s32 (!%p173_p2), 3, %v1608_v2  ;;  %v236_v5 = vsub.s32 (!%p173_p2), 0, %v1608_v2  ;;  %v1620_v6 = vadd.s32 (!%p173_p2), 8, %v1608_v2 }
   0xa   : > { %v244_v7 = vsub.s32 (!%p173_p2), 2, %v1608_v2  ;;  %v1624_v9 = vadd.s32 (!%p173_p2), 16, %v1608_v2  ;;  %v1627_v10 = vadd.s32 (!%p173_p2), 24, %v1608_v2  ;;  %v1667_v16 = vadd.s32 (!%p173_p2), 32, %v1608_v2 }
   0xb   : > { %v1670_v17 = vadd.s32 (!%p173_p2), 40, %v1608_v2  ;;  %v1693_v18 = vadd.s32 (!%p173_p2), 48, %v1608_v2  ;;  %v1696_v19 = vadd.s32 (!%p173_p2), 56, %v1608_v2  ;;  %v1719_v20 = vadd.s32 (!%p173_p2), 64, %v1608_v2 }
   0xc   : > { %v1722_v21 = vadd.s32 (!%p173_p2), 72, %v1608_v2  ;;  %v1745_v22 = vadd.s32 (!%p173_p2), 80, %v1608_v2  ;;  %v1748_v23 = vadd.s32 (!%p173_p2), 88, %v1608_v2  ;;  %v1771_v24 = vadd.s32 (!%p173_p2), 96, %v1608_v2 }
   0xd   : > { %s2092_s17 = smov (!%p201_p3, %s1161_s17), 7  ;;  %v1774_v25 = vadd.s32 104, %v1608_v2  ;;  %v1801_v26 = vadd.s32 112, %v1608_v2  ;;  %v1804_v27 = vadd.s32 120, %v1608_v2 }
   0xe   : > { %s203_s20 = scalar_lea.vmem %s2086_s0, %s2092_s17  ;;  %s208_s23 = scalar_lea.vmem %s2087_s1, %s2092_s17 }
   0xf   : > { %v215_v8 = vld [vmem:[%s203_s20] sm:$0xf]  ;;  %s213_s18 = scalar_lea.vmem %s2090_s4, %s2092_s17 }
  0x10   : > { %v1631_v11 = vrot.slane %v215_v8, %v240_v3  ;;  %v1635_v12 = vrot.slane %v215_v8, %v248_v4  ;;  %v1639_v13 = vrot.slane %v215_v8, %v236_v5  ;;  %v1643_v14 = vrot.slane %v215_v8, %v244_v7  ;;  %v216_v28 = vld [vmem:[%s208_s23] sm:$0xf] }
  0x11   : > { %v1828_v29 = vrot.slane %v216_v28, %v240_v3  ;;  %v1837_v30 = vrot.slane %v216_v28, %v248_v4  ;;  %v1846_v31 = vrot.slane %v216_v28, %v236_v5  ;;  %v1855_v32 = vrot.slane %v216_v28, %v244_v7 }
  0x12   : > { %vm251_vm0 = vcmp.eq.s32.totalorder %v1608_v2, %v1631_v11  ;;  %vm255_vm1 = vcmp.eq.s32.totalorder %v1620_v6, %v1631_v11  ;;  %vm253_vm2 = vcmp.eq.s32.totalorder %v1608_v2, %v1635_v12  ;;  %vm257_vm3 = vcmp.eq.s32.totalorder %v1620_v6, %v1635_v12 }
  0x13   : > { %vm1422_vm4 = vmpackc.low %vm255_vm1, %vm251_vm0  ;;  %vm250_vm5 = vcmp.eq.s32.totalorder %v1608_v2, %v1639_v13  ;;  %vm254_vm6 = vcmp.eq.s32.totalorder %v1620_v6, %v1639_v13  ;;  %vm252_vm7 = vcmp.eq.s32.totalorder %v1608_v2, %v1643_v14  ;;  %vm256_vm8 = vcmp.eq.s32.totalorder %v1620_v6, %v1643_v14 }
  0x14   : > { %1423 = vmatprep.subr.msk.bf16.mxu0 %vm1422_vm4, %v1570_v15  ;;  %vm1454_vm9 = vmpackc.low %vm257_vm3, %vm253_vm2  ;;  %vm259_vm10 = vcmp.eq.s32.totalorder %v1624_v9, %v1631_v11  ;;  %vm263_vm11 = vcmp.eq.s32.totalorder %v1627_v10, %v1631_v11  ;;  %vm261_vm13 = vcmp.eq.s32.totalorder %v1624_v9, %v1635_v12  ;;  %vm265_vm14 = vcmp.eq.s32.totalorder %v1627_v10, %v1635_v12 }
  0x15   : > { %1455 = vmatprep.subr.msk.bf16.mxu1 %vm1454_vm9, %v1570_v15  ;;  %vm1424_vm12 = vmpackc.low %vm254_vm6, %vm250_vm5  ;;  %vm258_vm0 = vcmp.eq.s32.totalorder %v1624_v9, %v1639_v13  ;;  %vm262_vm1 = vcmp.eq.s32.totalorder %v1627_v10, %v1639_v13  ;;  %vm260_vm3 = vcmp.eq.s32.totalorder %v1624_v9, %v1643_v14  ;;  %vm264_vm4 = vcmp.eq.s32.totalorder %v1627_v10, %v1643_v14 }
  0x16   : > { %1425 = vmatpush1.bf16.msk.msra.mxu0 %vm1424_vm12, %v1570_v15  ;;  %vm1456_vm15 = vmpackc.low %vm256_vm8, %vm252_vm7  ;;  %vm267_vm6 = vcmp.eq.s32.totalorder %v1667_v16, %v1631_v11  ;;  %vm271_vm7 = vcmp.eq.s32.totalorder %v1670_v17, %v1631_v11  ;;  %vm269_vm9 = vcmp.eq.s32.totalorder %v1667_v16, %v1635_v12  ;;  %vm266_vm12 = vcmp.eq.s32.totalorder %v1667_v16, %v1639_v13 }
  0x17   : > { %1457 = vmatpush1.bf16.msk.msra.mxu1 %vm1456_vm15, %v1570_v15  ;;  %vm1426_vm2 = vmpackc.low %vm263_vm11, %vm259_vm10  ;;  %vm273_vm10 = vcmp.eq.s32.totalorder %v1670_v17, %v1635_v12  ;;  %vm268_vm15 = vcmp.eq.s32.totalorder %v1667_v16, %v1643_v14 }
  0x18   : > { %1427 = vmatprep.subr.msk.bf16.mxu0 %vm1426_vm2, %v1570_v15  ;;  %vm1458_vm5 = vmpackc.low %vm265_vm14, %vm261_vm13  ;;  %vm270_vm13 = vcmp.eq.s32.totalorder %v1670_v17, %v1639_v13  ;;  %vm275_vm2 = vcmp.eq.s32.totalorder %v1693_v18, %v1631_v11 }
  0x19   : > { %1459 = vmatprep.subr.msk.bf16.mxu1 %vm1458_vm5, %v1570_v15  ;;  %vm1428_vm8 = vmpackc.low %vm262_vm1, %vm258_vm0  ;;  %vm272_vm0 = vcmp.eq.s32.totalorder %v1670_v17, %v1643_v14  ;;  %vm277_vm5 = vcmp.eq.s32.totalorder %v1693_v18, %v1635_v12 }
  0x1a   : > { %1429 = vmatpush1.bf16.msk.msra.mxu0 %vm1428_vm8, %v1570_v15  ;;  %vm1460_vm11 = vmpackc.low %vm264_vm4, %vm260_vm3  ;;  %vm279_vm3 = vcmp.eq.s32.totalorder %v1696_v19, %v1631_v11  ;;  %vm274_vm8 = vcmp.eq.s32.totalorder %v1693_v18, %v1639_v13 }
  0x1b   : > { %1461 = vmatpush1.bf16.msk.msra.mxu1 %vm1460_vm11, %v1570_v15  ;;  %vm1430_vm14 = vmpackc.low %vm271_vm7, %vm267_vm6  ;;  %vm281_vm6 = vcmp.eq.s32.totalorder %v1696_v19, %v1635_v12  ;;  %vm276_vm11 = vcmp.eq.s32.totalorder %v1693_v18, %v1643_v14 }
  0x1c   : > { %1431 = vmatprep.subr.msk.bf16.mxu0 %vm1430_vm14, %v1570_v15  ;;  %vm1462_vm1 = vmpackc.low %vm273_vm10, %vm269_vm9  ;;  %vm278_vm9 = vcmp.eq.s32.totalorder %v1696_v19, %v1639_v13  ;;  %vm283_vm14 = vcmp.eq.s32.totalorder %v1719_v20, %v1631_v11 }
  0x1d   : > { %1463 = vmatprep.subr.msk.bf16.mxu1 %vm1462_vm1, %v1570_v15  ;;  %vm1432_vm4 = vmpackc.low %vm270_vm13, %vm266_vm12  ;;  %vm280_vm12 = vcmp.eq.s32.totalorder %v1696_v19, %v1643_v14  ;;  %vm285_vm1 = vcmp.eq.s32.totalorder %v1719_v20, %v1635_v12 }
  0x1e   : > { %1433 = vmatpush1.bf16.msk.msra.mxu0 %vm1432_vm4, %v1570_v15  ;;  %vm1464_vm7 = vmpackc.low %vm272_vm0, %vm268_vm15  ;;  %vm287_vm15 = vcmp.eq.s32.totalorder %v1722_v21, %v1631_v11  ;;  %vm282_vm4 = vcmp.eq.s32.totalorder %v1719_v20, %v1639_v13 }
  0x1f   : > { %1465 = vmatpush1.bf16.msk.msra.mxu1 %vm1464_vm7, %v1570_v15  ;;  %vm1434_vm10 = vmpackc.low %vm279_vm3, %vm275_vm2  ;;  %vm289_vm2 = vcmp.eq.s32.totalorder %v1722_v21, %v1635_v12  ;;  %vm284_vm7 = vcmp.eq.s32.totalorder %v1719_v20, %v1643_v14 }
  0x20   : > { %1435 = vmatprep.subr.msk.bf16.mxu0 %vm1434_vm10, %v1570_v15  ;;  %vm1466_vm13 = vmpackc.low %vm281_vm6, %vm277_vm5  ;;  %vm286_vm5 = vcmp.eq.s32.totalorder %v1722_v21, %v1639_v13  ;;  %vm291_vm10 = vcmp.eq.s32.totalorder %v1745_v22, %v1631_v11 }
  0x21   : > { %1467 = vmatprep.subr.msk.bf16.mxu1 %vm1466_vm13, %v1570_v15  ;;  %vm1436_vm0 = vmpackc.low %vm278_vm9, %vm274_vm8  ;;  %vm288_vm8 = vcmp.eq.s32.totalorder %v1722_v21, %v1643_v14  ;;  %vm293_vm13 = vcmp.eq.s32.totalorder %v1745_v22, %v1635_v12 }
  0x22   : > { %1437 = vmatpush1.bf16.msk.msra.mxu0 %vm1436_vm0, %v1570_v15  ;;  %vm1468_vm3 = vmpackc.low %vm280_vm12, %vm276_vm11  ;;  %vm295_vm11 = vcmp.eq.s32.totalorder %v1748_v23, %v1631_v11  ;;  %vm290_vm0 = vcmp.eq.s32.totalorder %v1745_v22, %v1639_v13 }
  0x23   : > { %1469 = vmatpush1.bf16.msk.msra.mxu1 %vm1468_vm3, %v1570_v15  ;;  %vm1438_vm6 = vmpackc.low %vm287_vm15, %vm283_vm14  ;;  %vm297_vm14 = vcmp.eq.s32.totalorder %v1748_v23, %v1635_v12  ;;  %vm292_vm3 = vcmp.eq.s32.totalorder %v1745_v22, %v1643_v14 }
  0x24   : > { %1439 = vmatprep.subr.msk.bf16.mxu0 %vm1438_vm6, %v1570_v15  ;;  %vm1470_vm9 = vmpackc.low %vm289_vm2, %vm285_vm1  ;;  %vm294_vm1 = vcmp.eq.s32.totalorder %v1748_v23, %v1639_v13  ;;  %vm299_vm6 = vcmp.eq.s32.totalorder %v1771_v24, %v1631_v11 }
  0x25   : > { %1471 = vmatprep.subr.msk.bf16.mxu1 %vm1470_vm9, %v1570_v15  ;;  %vm1440_vm12 = vmpackc.low %vm286_vm5, %vm282_vm4  ;;  %vm296_vm4 = vcmp.eq.s32.totalorder %v1748_v23, %v1643_v14  ;;  %vm301_vm9 = vcmp.eq.s32.totalorder %v1771_v24, %v1635_v12 }
  0x26   : > { %1441 = vmatpush1.bf16.msk.msra.mxu0 %vm1440_vm12, %v1570_v15  ;;  %vm1472_vm15 = vmpackc.low %vm288_vm8, %vm284_vm7  ;;  %vm303_vm7 = vcmp.eq.s32.totalorder %v1774_v25, %v1631_v11  ;;  %vm298_vm12 = vcmp.eq.s32.totalorder %v1771_v24, %v1639_v13 }
  0x27   : > { %1473 = vmatpush1.bf16.msk.msra.mxu1 %vm1472_vm15, %v1570_v15  ;;  %vm1442_vm2 = vmpackc.low %vm295_vm11, %vm291_vm10  ;;  %vm305_vm10 = vcmp.eq.s32.totalorder %v1774_v25, %v1635_v12  ;;  %vm300_vm15 = vcmp.eq.s32.totalorder %v1771_v24, %v1643_v14 }
  0x28   : > { %1443 = vmatprep.subr.msk.bf16.mxu0 %vm1442_vm2, %v1570_v15  ;;  %vm1474_vm5 = vmpackc.low %vm297_vm14, %vm293_vm13  ;;  %vm302_vm13 = vcmp.eq.s32.totalorder %v1774_v25, %v1639_v13  ;;  %vm307_vm2 = vcmp.eq.s32.totalorder %v1801_v26, %v1631_v11 }
  0x29   : > { %1475 = vmatprep.subr.msk.bf16.mxu1 %vm1474_vm5, %v1570_v15  ;;  %vm1444_vm8 = vmpackc.low %vm294_vm1, %vm290_vm0  ;;  %vm304_vm0 = vcmp.eq.s32.totalorder %v1774_v25, %v1643_v14  ;;  %vm309_vm5 = vcmp.eq.s32.totalorder %v1801_v26, %v1635_v12 }
  0x2a   : > { %1445 = vmatpush1.bf16.msk.msra.mxu0 %vm1444_vm8, %v1570_v15  ;;  %vm1476_vm11 = vmpackc.low %vm296_vm4, %vm292_vm3  ;;  %vm311_vm3 = vcmp.eq.s32.totalorder %v1804_v27, %v1631_v11  ;;  %vm306_vm8 = vcmp.eq.s32.totalorder %v1801_v26, %v1639_v13 }
  0x2b   : > { %1477 = vmatpush1.bf16.msk.msra.mxu1 %vm1476_vm11, %v1570_v15  ;;  %vm1446_vm14 = vmpackc.low %vm303_vm7, %vm299_vm6  ;;  %vm313_vm6 = vcmp.eq.s32.totalorder %v1804_v27, %v1635_v12  ;;  %vm308_vm11 = vcmp.eq.s32.totalorder %v1801_v26, %v1643_v14 }
  0x2c   : > { %1447 = vmatprep.subr.msk.bf16.mxu0 %vm1446_vm14, %v1570_v15  ;;  %vm1478_vm1 = vmpackc.low %vm305_vm10, %vm301_vm9  ;;  %vm310_vm9 = vcmp.eq.s32.totalorder %v1804_v27, %v1639_v13  ;;  %vm459_vm14 = vcmp.eq.s32.totalorder %v1608_v2, %v1828_v29 }
  0x2d   : > { %1479 = vmatprep.subr.msk.bf16.mxu1 %vm1478_vm1, %v1570_v15  ;;  %vm1448_vm4 = vmpackc.low %vm302_vm13, %vm298_vm12  ;;  %vm312_vm12 = vcmp.eq.s32.totalorder %v1804_v27, %v1643_v14  ;;  %vm461_vm1 = vcmp.eq.s32.totalorder %v1608_v2, %v1837_v30 }
  0x2e   : > { %1449 = vmatpush1.bf16.msk.msra.mxu0 %vm1448_vm4, %v1570_v15  ;;  %vm1480_vm7 = vmpackc.low %vm304_vm0, %vm300_vm15  ;;  %vm463_vm15 = vcmp.eq.s32.totalorder %v1620_v6, %v1828_v29  ;;  %vm458_vm4 = vcmp.eq.s32.totalorder %v1608_v2, %v1846_v31 }
  0x2f   : > { %1481 = vmatpush1.bf16.msk.msra.mxu1 %vm1480_vm7, %v1570_v15  ;;  %vm1450_vm10 = vmpackc.low %vm311_vm3, %vm307_vm2  ;;  %vm465_vm2 = vcmp.eq.s32.totalorder %v1620_v6, %v1837_v30  ;;  %vm460_vm7 = vcmp.eq.s32.totalorder %v1608_v2, %v1855_v32 }
  0x30   : > { %1451 = vmatprep.subr.msk.bf16.mxu0 %vm1450_vm10, %v1570_v15  ;;  %vm1482_vm13 = vmpackc.low %vm313_vm6, %vm309_vm5  ;;  %vm462_vm5 = vcmp.eq.s32.totalorder %v1620_v6, %v1846_v31  ;;  %vm467_vm10 = vcmp.eq.s32.totalorder %v1624_v9, %v1828_v29 }
  0x31   : > { %1483 = vmatprep.subr.msk.bf16.mxu1 %vm1482_vm13, %v1570_v15  ;;  %vm1452_vm0 = vmpackc.low %vm310_vm9, %vm306_vm8  ;;  %vm464_vm8 = vcmp.eq.s32.totalorder %v1620_v6, %v1855_v32  ;;  %vm469_vm13 = vcmp.eq.s32.totalorder %v1624_v9, %v1837_v30 }
  0x32   : > { %1453 = vmatpush1.bf16.msk.msra.mxu0 %vm1452_vm0, %v1570_v15  ;;  %vm1484_vm3 = vmpackc.low %vm312_vm12, %vm308_vm11  ;;  %vm471_vm11 = vcmp.eq.s32.totalorder %v1627_v10, %v1828_v29  ;;  %vm466_vm0 = vcmp.eq.s32.totalorder %v1624_v9, %v1846_v31 }
  0x33   : > { %1485 = vmatpush1.bf16.msk.msra.mxu1 %vm1484_vm3, %v1570_v15  ;;  %vm1486_vm6 = vmpackc.low %vm463_vm15, %vm459_vm14  ;;  %vm473_vm14 = vcmp.eq.s32.totalorder %v1627_v10, %v1837_v30  ;;  %vm468_vm3 = vcmp.eq.s32.totalorder %v1624_v9, %v1855_v32 }
  0x34   : > { %1487 = vmatprep.subr.msk.bf16.mxu0 %vm1486_vm6, %v1570_v15  ;;  %vm1518_vm9 = vmpackc.low %vm465_vm2, %vm461_vm1  ;;  %vm470_vm1 = vcmp.eq.s32.totalorder %v1627_v10, %v1846_v31  ;;  %vm475_vm6 = vcmp.eq.s32.totalorder %v1667_v16, %v1828_v29 }
  0x35   : > { %719 = vmatmul.mubr.f32.vlgmr.msra.gmra.mrb[0].mxu0 %v650_v33  ;;  %1519 = vmatprep.subr.msk.bf16.mxu1 %vm1518_vm9, %v1570_v15  ;;  %vm1488_vm12 = vmpackc.low %vm462_vm5, %vm458_vm4  ;;  %vm472_vm4 = vcmp.eq.s32.totalorder %v1627_v10, %v1855_v32  ;;  %vm477_vm9 = vcmp.eq.s32.totalorder %v1667_v16, %v1837_v30 }
  0x36   : > { %808 = vmatmul.mubr.f32.vlgmr.msra.gmra.mrb[0].mxu1 %v650_v33  ;;  %1489 = vmatpush1.bf16.msk.msra.mxu0 %vm1488_vm12, %v1570_v15  ;;  %vm1520_vm15 = vmpackc.low %vm464_vm8, %vm460_vm7  ;;  %vm479_vm7 = vcmp.eq.s32.totalorder %v1670_v17, %v1828_v29  ;;  %vm474_vm12 = vcmp.eq.s32.totalorder %v1667_v16, %v1846_v31 }
  0x37   : > { %1521 = vmatpush1.bf16.msk.msra.mxu1 %vm1520_vm15, %v1570_v15  ;;  %vm1490_vm2 = vmpackc.low %vm471_vm11, %vm467_vm10  ;;  %724 = vmatprep.mubr.f32.mxu0 %v1569_v1  ;;  %vm481_vm10 = vcmp.eq.s32.totalorder %v1670_v17, %v1837_v30  ;;  %vm476_vm15 = vcmp.eq.s32.totalorder %v1667_v16, %v1855_v32 }
  0x38   : > { %1491 = vmatprep.subr.msk.bf16.mxu0 %vm1490_vm2, %v1570_v15  ;;  %vm1522_vm5 = vmpackc.low %vm473_vm14, %vm469_vm13  ;;  %813 = vmatprep.mubr.f32.mxu1 %v1569_v1  ;;  %vm478_vm13 = vcmp.eq.s32.totalorder %v1670_v17, %v1846_v31  ;;  %vm483_vm2 = vcmp.eq.s32.totalorder %v1693_v18, %v1828_v29 }
  0x39   : > { %1523 = vmatprep.subr.msk.bf16.mxu1 %vm1522_vm5, %v1570_v15  ;;  %vm1492_vm8 = vmpackc.low %vm470_vm1, %vm466_vm0  ;;  %725 = vmatmul.mubr.f32.gmra.mrb[2].mxu0 %v651_v34  ;;  %vm480_vm0 = vcmp.eq.s32.totalorder %v1670_v17, %v1855_v32  ;;  %vm485_vm5 = vcmp.eq.s32.totalorder %v1693_v18, %v1837_v30 }
  0x3a   : > { %1493 = vmatpush1.bf16.msk.msra.mxu0 %vm1492_vm8, %v1570_v15  ;;  %vm1524_vm11 = vmpackc.low %vm472_vm4, %vm468_vm3  ;;  %814 = vmatmul.mubr.f32.gmra.mrb[2].mxu1 %v651_v34  ;;  %vm487_vm3 = vcmp.eq.s32.totalorder %v1696_v19, %v1828_v29  ;;  %vm482_vm8 = vcmp.eq.s32.totalorder %v1693_v18, %v1846_v31 }
  0x3b   : > { %1525 = vmatpush1.bf16.msk.msra.mxu1 %vm1524_vm11, %v1570_v15  ;;  %vm1494_vm14 = vmpackc.low %vm479_vm7, %vm475_vm6  ;;  %730 = vmatprep.mubr.f32.mxu0 %v1569_v1  ;;  %vm489_vm6 = vcmp.eq.s32.totalorder %v1696_v19, %v1837_v30  ;;  %vm484_vm11 = vcmp.eq.s32.totalorder %v1693_v18, %v1855_v32 }
  0x3c   : > { %1495 = vmatprep.subr.msk.bf16.mxu0 %vm1494_vm14, %v1570_v15  ;;  %vm1526_vm1 = vmpackc.low %vm481_vm10, %vm477_vm9  ;;  %819 = vmatprep.mubr.f32.mxu1 %v1569_v1  ;;  %vm486_vm9 = vcmp.eq.s32.totalorder %v1696_v19, %v1846_v31  ;;  %vm491_vm14 = vcmp.eq.s32.totalorder %v1719_v20, %v1828_v29 }
  0x3d   : > { %1527 = vmatprep.subr.msk.bf16.mxu1 %vm1526_vm1, %v1570_v15  ;;  %vm1496_vm4 = vmpackc.low %vm478_vm13, %vm474_vm12  ;;  %731 = vmatmul.mubr.f32.gmra.mrb[4].mxu0 %v652_v35  ;;  %vm488_vm12 = vcmp.eq.s32.totalorder %v1696_v19, %v1855_v32  ;;  %vm493_vm1 = vcmp.eq.s32.totalorder %v1719_v20, %v1837_v30 }
  0x3e   : > { %1497 = vmatpush1.bf16.msk.msra.mxu0 %vm1496_vm4, %v1570_v15  ;;  %vm1528_vm7 = vmpackc.low %vm480_vm0, %vm476_vm15  ;;  %820 = vmatmul.mubr.f32.gmra.mrb[4].mxu1 %v652_v35  ;;  %vm495_vm15 = vcmp.eq.s32.totalorder %v1722_v21, %v1828_v29  ;;  %vm490_vm4 = vcmp.eq.s32.totalorder %v1719_v20, %v1846_v31 }
  0x3f   : > { %1529 = vmatpush1.bf16.msk.msra.mxu1 %vm1528_vm7, %v1570_v15  ;;  %vm1498_vm10 = vmpackc.low %vm487_vm3, %vm483_vm2  ;;  %736 = vmatprep.mubr.f32.mxu0 %v1569_v1  ;;  %vm497_vm2 = vcmp.eq.s32.totalorder %v1722_v21, %v1837_v30  ;;  %vm492_vm7 = vcmp.eq.s32.totalorder %v1719_v20, %v1855_v32 }
  0x40   : > { %1499 = vmatprep.subr.msk.bf16.mxu0 %vm1498_vm10, %v1570_v15  ;;  %vm1530_vm13 = vmpackc.low %vm489_vm6, %vm485_vm5  ;;  %825 = vmatprep.mubr.f32.mxu1 %v1569_v1  ;;  %vm494_vm5 = vcmp.eq.s32.totalorder %v1722_v21, %v1846_v31  ;;  %vm499_vm10 = vcmp.eq.s32.totalorder %v1745_v22, %v1828_v29 }
  0x41   : > { %1531 = vmatprep.subr.msk.bf16.mxu1 %vm1530_vm13, %v1570_v15  ;;  %vm1500_vm0 = vmpackc.low %vm486_vm9, %vm482_vm8  ;;  %737 = vmatmul.mubr.f32.gmra.mrb[6].mxu0 %v653_v36  ;;  %vm496_vm8 = vcmp.eq.s32.totalorder %v1722_v21, %v1855_v32  ;;  %vm501_vm13 = vcmp.eq.s32.totalorder %v1745_v22, %v1837_v30 }
  0x42   : > { %1501 = vmatpush1.bf16.msk.msra.mxu0 %vm1500_vm0, %v1570_v15  ;;  %vm1532_vm3 = vmpackc.low %vm488_vm12, %vm484_vm11  ;;  %826 = vmatmul.mubr.f32.gmra.mrb[6].mxu1 %v653_v36  ;;  %vm503_vm11 = vcmp.eq.s32.totalorder %v1748_v23, %v1828_v29  ;;  %vm498_vm0 = vcmp.eq.s32.totalorder %v1745_v22, %v1846_v31 }
  0x43   : > { %1533 = vmatpush1.bf16.msk.msra.mxu1 %vm1532_vm3, %v1570_v15  ;;  %vm1502_vm6 = vmpackc.low %vm495_vm15, %vm491_vm14  ;;  %900 = vmatprep.mubr.f32.mxu0 %v1569_v1  ;;  %vm505_vm14 = vcmp.eq.s32.totalorder %v1748_v23, %v1837_v30  ;;  %vm500_vm3 = vcmp.eq.s32.totalorder %v1745_v22, %v1855_v32 }
  0x44   : > { %1503 = vmatprep.subr.msk.bf16.mxu0 %vm1502_vm6, %v1570_v15  ;;  %vm1534_vm9 = vmpackc.low %vm497_vm2, %vm493_vm1  ;;  %989 = vmatprep.mubr.f32.mxu1 %v1569_v1  ;;  %vm502_vm1 = vcmp.eq.s32.totalorder %v1748_v23, %v1846_v31  ;;  %vm507_vm6 = vcmp.eq.s32.totalorder %v1771_v24, %v1828_v29 }
  0x45   : > { %1535 = vmatprep.subr.msk.bf16.mxu1 %vm1534_vm9, %v1570_v15  ;;  %vm1504_vm12 = vmpackc.low %vm494_vm5, %vm490_vm4  ;;  %vm504_vm4 = vcmp.eq.s32.totalorder %v1748_v23, %v1855_v32  ;;  %vm509_vm9 = vcmp.eq.s32.totalorder %v1771_v24, %v1837_v30 }
  0x46   : > { %1505 = vmatpush1.bf16.msk.msra.mxu0 %vm1504_vm12, %v1570_v15  ;;  %vm1536_vm15 = vmpackc.low %vm496_vm8, %vm492_vm7  ;;  %vm511_vm7 = vcmp.eq.s32.totalorder %v1774_v25, %v1828_v29  ;;  %vm506_vm12 = vcmp.eq.s32.totalorder %v1771_v24, %v1846_v31 }
  0x47   : > { %1537 = vmatpush1.bf16.msk.msra.mxu1 %vm1536_vm15, %v1570_v15  ;;  %vm1506_vm2 = vmpackc.low %vm503_vm11, %vm499_vm10  ;;  %vm513_vm10 = vcmp.eq.s32.totalorder %v1774_v25, %v1837_v30  ;;  %vm508_vm15 = vcmp.eq.s32.totalorder %v1771_v24, %v1855_v32 }
  0x48   : > { %1507 = vmatprep.subr.msk.bf16.mxu0 %vm1506_vm2, %v1570_v15  ;;  %vm1538_vm5 = vmpackc.low %vm505_vm14, %vm501_vm13  ;;  %vm510_vm13 = vcmp.eq.s32.totalorder %v1774_v25, %v1846_v31  ;;  %vm515_vm2 = vcmp.eq.s32.totalorder %v1801_v26, %v1828_v29 }
  0x49   : > { %1539 = vmatprep.subr.msk.bf16.mxu1 %vm1538_vm5, %v1570_v15  ;;  %vm1508_vm8 = vmpackc.low %vm502_vm1, %vm498_vm0  ;;  %vm512_vm0 = vcmp.eq.s32.totalorder %v1774_v25, %v1855_v32  ;;  %vm517_vm5 = vcmp.eq.s32.totalorder %v1801_v26, %v1837_v30 }
  0x4a   : > { %1509 = vmatpush1.bf16.msk.msra.mxu0 %vm1508_vm8, %v1570_v15  ;;  %vm1540_vm11 = vmpackc.low %vm504_vm4, %vm500_vm3  ;;  %vm519_vm3 = vcmp.eq.s32.totalorder %v1804_v27, %v1828_v29  ;;  %vm514_vm8 = vcmp.eq.s32.totalorder %v1801_v26, %v1846_v31 }
  0x4b   : > { %1541 = vmatpush1.bf16.msk.msra.mxu1 %vm1540_vm11, %v1570_v15  ;;  %vm1510_vm14 = vmpackc.low %vm511_vm7, %vm507_vm6  ;;  %vm521_vm6 = vcmp.eq.s32.totalorder %v1804_v27, %v1837_v30  ;;  %vm516_vm11 = vcmp.eq.s32.totalorder %v1801_v26, %v1855_v32 }
  0x4c   : > { %1511 = vmatprep.subr.msk.bf16.mxu0 %vm1510_vm14, %v1570_v15  ;;  %vm1542_vm1 = vmpackc.low %vm513_vm10, %vm509_vm9  ;;  %vm518_vm9 = vcmp.eq.s32.totalorder %v1804_v27, %v1846_v31 }
  0x4d   : > { %1543 = vmatprep.subr.msk.bf16.mxu1 %vm1542_vm1, %v1570_v15  ;;  %vm1512_vm4 = vmpackc.low %vm510_vm13, %vm506_vm12  ;;  %vm520_vm12 = vcmp.eq.s32.totalorder %v1804_v27, %v1855_v32 }
  0x4e   : > { %1513 = vmatpush1.bf16.msk.msra.mxu0 %vm1512_vm4, %v1570_v15  ;;  %vm1544_vm7 = vmpackc.low %vm512_vm0, %vm508_vm15  ;;  %vm1097_vm0 = vcmp.lt.s32.totalorder %v217_v0, 512 }
  0x4f   : > { %1545 = vmatpush1.bf16.msk.msra.mxu1 %vm1544_vm7, %v1570_v15  ;;  %vm1514_vm10 = vmpackc.low %vm519_vm3, %vm515_vm2 }
  0x50   : > { %1515 = vmatprep.subr.msk.bf16.mxu0 %vm1514_vm10, %v1570_v15  ;;  %vm1546_vm13 = vmpackc.low %vm521_vm6, %vm517_vm5 }
  0x51   : > { %1547 = vmatprep.subr.msk.bf16.mxu1 %vm1546_vm13, %v1570_v15  ;;  %vm1516_vm14 = vmpackc.low %vm518_vm9, %vm514_vm8 }
  0x52   : > { %1517 = vmatpush1.bf16.msk.msra.mxu0 %vm1516_vm14, %v1570_v15  ;;  %vm1548_vm15 = vmpackc.low %vm520_vm12, %vm516_vm11 }
  0x53   : > { %1549 = vmatpush1.bf16.msk.msra.mxu1 %vm1548_vm15, %v1570_v15 }
  0x55   : > { %901 = vmatmul.mubr.f32.vlgmr.msra.gmra.mrb[8].mxu0 %v832_v37 }
  0x56   : > { %990 = vmatmul.mubr.f32.vlgmr.msra.gmra.mrb[8].mxu1 %v832_v37  ;;  %906 = vmatprep.mubr.f32.mxu0 %v1569_v1 }
  0x57   : > { %995 = vmatprep.mubr.f32.mxu1 %v1569_v1 }
  0x59   : > { %907 = vmatmul.mubr.f32.gmra.mrb[10].mxu0 %v833_v38 }
  0x5a   : > { %996 = vmatmul.mubr.f32.gmra.mrb[10].mxu1 %v833_v38  ;;  %912 = vmatprep.mubr.f32.mxu0 %v1569_v1 }
  0x5b   : > { %1001 = vmatprep.mubr.f32.mxu1 %v1569_v1 }
  0x5d   : > { %913 = vmatmul.mubr.f32.gmra.mrb[12].mxu0 %v834_v39 }
  0x5e   : > { %1002 = vmatmul.mubr.f32.gmra.mrb[12].mxu1 %v834_v39  ;;  %918 = vmatprep.mubr.f32.mxu0 %v1569_v1 }
  0x5f   : > { %1007 = vmatprep.mubr.f32.mxu1 %v1569_v1 }
  0x61   : > { %919 = vmatmul.mubr.f32.gmra.mrb[14].mxu0 %v835_v40 }
  0x62   : > { %1008 = vmatmul.mubr.f32.gmra.mrb[14].mxu1 %v835_v40 }
 0x108   : > { %v720_v41 = vpop.f32.mrb[0].mxu0 }
 0x109   : > { %v809_v42 = vpop.f32.mrb[0].mxu1  ;;  %v722_v43 = vpop.f32.mrb[1].mxu0 }
 0x10a   : > { %v811_v44 = vpop.f32.mrb[1].mxu1 }
 0x10c   : > { %v726_v45 = vpop.f32.mrb[2].mxu0 }
 0x10d   : > { %v815_v46 = vpop.f32.mrb[2].mxu1  ;;  %v728_v47 = vpop.f32.mrb[3].mxu0 }
 0x10e   : > { %v817_v48 = vpop.f32.mrb[3].mxu1 }
 0x110   : > { %v732_v49 = vpop.f32.mrb[4].mxu0 }
 0x111   : > { %v821_v50 = vpop.f32.mrb[4].mxu1  ;;  %v734_v51 = vpop.f32.mrb[5].mxu0 }
 0x112   : > { %v823_v52 = vpop.f32.mrb[5].mxu1 }
 0x114   : > { %v738_v53 = vpop.f32.mrb[6].mxu0 }
 0x115   : > { %v827_v54 = vpop.f32.mrb[6].mxu1  ;;  %v740_v55 = vpop.f32.mrb[7].mxu0 }
 0x116   : > { %v829_v56 = vpop.f32.mrb[7].mxu1 }
 0x128   : > { %v902_v57 = vpop.f32.mrb[8].mxu0 }
 0x129   : > { %v1014_v58 = vmul.f32 %v902_v57, %v720_v41  ;;  %v991_v59 = vpop.f32.mrb[8].mxu1  ;;  %v904_v60 = vpop.f32.mrb[9].mxu0 }
 0x12a   : > { %v1016_v61 = vmul.f32 %v991_v59, %v809_v42  ;;  %v1015_v62 = vmul.f32 %v904_v60, %v722_v43  ;;  %v993_v63 = vpop.f32.mrb[9].mxu1 }
 0x12b   : > { %v1017_v1 = vmul.f32 %v993_v63, %v811_v44 }
 0x12c   : > { %v908_v3 = vpop.f32.mrb[10].mxu0 }
 0x12d   : > { %v1018_v4 = vmul.f32 %v908_v3, %v726_v45  ;;  %v997_v5 = vpop.f32.mrb[10].mxu1  ;;  %v910_v6 = vpop.f32.mrb[11].mxu0 }
 0x12e   : > { %v1020_v7 = vmul.f32 %v997_v5, %v815_v46  ;;  %v1019_v8 = vmul.f32 %v910_v6, %v728_v47  ;;  %v999_v9 = vpop.f32.mrb[11].mxu1  ;;  %v1571_v46 = vmov 1966171168  }
 0x12f   : > { %v1030_v10 = vadd.f32 %v1018_v4, %v1014_v58  ;;  %v1021_v11 = vmul.f32 %v999_v9, %v817_v48  ;;  %v1073_v47 = vunpack.c.l.s4 %v1571_v46 }
 0x130   : > { %v1048_v12 = vadd.f32 %v1020_v7, %v1016_v61  ;;  %v1039_v13 = vadd.f32 %v1019_v8, %v1015_v62  ;;  %v914_v14 = vpop.f32.mrb[12].mxu0 }
 0x131   : > { %v1057_v15 = vadd.f32 %v1021_v11, %v1017_v1  ;;  %v1022_v16 = vmul.f32 %v914_v14, %v732_v49  ;;  %v1003_v17 = vpop.f32.mrb[12].mxu1  ;;  %v916_v18 = vpop.f32.mrb[13].mxu0 }
 0x132   : > { %v1024_v19 = vmul.f32 %v1003_v17, %v821_v50  ;;  %v1023_v20 = vmul.f32 %v916_v18, %v734_v51  ;;  %v1005_v21 = vpop.f32.mrb[13].mxu1 }
 0x133   : > { %v1031_v22 = vadd.f32 %v1030_v10, %v1022_v16  ;;  %v1025_v23 = vmul.f32 %v1005_v21, %v823_v52 }
 0x134   : > { %v1049_v24 = vadd.f32 %v1048_v12, %v1024_v19  ;;  %v1040_v25 = vadd.f32 %v1039_v13, %v1023_v20  ;;  %v920_v26 = vpop.f32.mrb[14].mxu0 }
 0x135   : > { %v1058_v27 = vadd.f32 %v1057_v15, %v1025_v23  ;;  %v1026_v28 = vmul.f32 %v920_v26, %v738_v53  ;;  %v1009_v29 = vpop.f32.mrb[14].mxu1  ;;  %v922_v30 = vpop.f32.mrb[15].mxu0 }
 0x136   : > { %v1028_v31 = vmul.f32 %v1009_v29, %v827_v54  ;;  %v1027_v32 = vmul.f32 %v922_v30, %v740_v55  ;;  %v1011_v33 = vpop.f32.mrb[15].mxu1 }
 0x137   : > { %v1032_v34 = vadd.f32 %v1031_v22, %v1026_v28  ;;  %v1029_v35 = vmul.f32 %v1011_v33, %v829_v56  ;;  %v1074_v56 = vunpack.c.0.s8 %v1073_v47 }
 0x138   : > { %v1050_v36 = vadd.f32 %v1049_v24, %v1028_v31  ;;  %v1041_v37 = vadd.f32 %v1040_v25, %v1027_v32 }
 0x139   : > { %v1033_v38 = vrot.slane %v1032_v34, 4  ;;  %v1059_v39 = vadd.f32 %v1058_v27, %v1029_v35  ;;  %v1077_v3 = vsub.s32 %v1074_v56, %v1608_v2 }
 0x13a   : > { %v1051_v40 = vrot.slane %v1050_v36, 4  ;;  %v1042_v41 = vrot.slane %v1041_v37, 4 }
 0x13b   : > { %v1034_v42 = vadd.f32 %v1033_v38, %v1032_v34  ;;  %v1060_v43 = vrot.slane %v1059_v39, 4 }
 0x13c   : > { %v1052_v44 = vadd.f32 %v1051_v40, %v1050_v36  ;;  %v1043_v45 = vadd.f32 %v1042_v41, %v1041_v37 }
 0x13d   : > { %v1035_v48 = vrot.slane %v1034_v42, 2  ;;  %v1061_v49 = vadd.f32 %v1060_v43, %v1059_v39 }
 0x13e   : > { %v1053_v50 = vrot.slane %v1052_v44, 2  ;;  %v1044_v51 = vrot.slane %v1043_v45, 2 }
 0x13f   : > { %v1036_v52 = vadd.f32 %v1035_v48, %v1034_v42  ;;  %v1062_v53 = vrot.slane %v1061_v49, 2 }
 0x140   : > { %v1054_v54 = vadd.f32 %v1053_v50, %v1052_v44  ;;  %v1045_v55 = vadd.f32 %v1044_v51, %v1043_v45 }
 0x141   : > { %v1037_v57 = vrot.slane %v1036_v52, 1  ;;  %v1063_v58 = vadd.f32 %v1062_v53, %v1061_v49 }
 0x142   : > { %v1055_v59 = vrot.slane %v1054_v54, 1  ;;  %v1046_v60 = vrot.slane %v1045_v55, 1 }
 0x143   : > { %v1038_v61 = vadd.f32 %v1037_v57, %v1036_v52  ;;  %v1064_v62 = vrot.slane %v1063_v58, 1 }
 0x144   : > { %v1056_v63 = vadd.f32 %v1055_v59, %v1054_v54  ;;  %v1047_v1 = vadd.f32 %v1046_v60, %v1045_v55 }
 0x145   : > { %v1065_v4 = vadd.f32 %v1064_v62, %v1063_v58 }
 0x146   : > { %v1070_v5 = vcombine.low %v1038_v61, %v1047_v1 }
 0x147   : > { %v1071_v6 = vcombine.low %v1056_v63, %v1065_v4 }
 0x148   : > { %v1078_v7 = vrot.slane %v1070_v5, %v1077_v3 }
 0x149   : > { %v1085_v8 = vrot.slane %v1071_v6, %v1077_v3 }
 0x14b   : > { %v1086_v9 = vcombine.low %v1078_v7, %v1085_v8 }
 0x14d   : > { %v1093_v10 = vrot.slane %v1086_v9, %v1077_v3 }
 0x14f   : > { %1099 = vst.msk [vmem:[%s213_s18] sm:$0xf] %vm1097_vm0, %v1093_v10 }
 0x150 PF: > { %s14_s15 = sadd.s32 1, %s1567_s15  }
 0x151   : > { %p11_p4 = scmp.ge.s32.totalorder %s14_s15, 4  }
 0x153   :  { %13 = sbr.rel (!%p11_p4) target bundleno = 1 (0x1), region = 69 }

</bundles_post_ra>
